<compile_context>
chip_gen: v6e
topology: v6e:2x2x1
jax: 0.10.0
libtpu: 0.0.40
codegen_flags: <defaults>
</compile_context>

<pallas_src>
import functools
import math

import jax
import jax.numpy as jnp
from jax.experimental import pallas as pl
from jax.experimental.pallas import tpu as pltpu


def _ssim_kernel(mask_ref, x_ref, y_ref, out_ref, *, H, KW):
    """One grid step = B packed groups of shape (H, KW), KW = k*W planes side by side."""
    x = x_ref[...].astype(jnp.float32)   # (B, H, KW)
    y = y_ref[...].astype(jnp.float32)

    # Precomputed in the wrapper, constant block index -> fetched once, resident.
    has_l = mask_ref[0]   # (H, KW): position has an in-plane left  neighbor
    has_r = mask_ref[1]   #          ... right neighbor
    has_t = mask_ref[2]   #          ... top neighbor
    has_b = mask_ref[3]   #          ... bottom neighbor

    def boxsum(a):
        # 3x3 box-filter SUM, stride 1, zero padding (the /9 is folded into constants).
        # roll(a, 1)      -> element j sees a[j-1]
        # roll(a, size-1) -> element j sees a[j+1]
        # The masks zero both the circular wrap of pltpu.roll and the bleed between
        # lane-packed planes, i.e. they reproduce zero padding.
        h = a + pltpu.roll(a, 1, 2) * has_l + pltpu.roll(a, KW - 1, 2) * has_r
        return h + pltpu.roll(h, 1, 1) * has_t + pltpu.roll(h, H - 1, 1) * has_b

    # Rescaled constants: everything below is 81x the original mu/sigma formulation,
    # which cancels exactly in the final ratio.
    C1_81 = 81.0 * (0.01 ** 2)
    C2_81 = 81.0 * (0.03 ** 2)

    s = x + y
    d = x - y
    Sx = boxsum(x)
    Sy = boxsum(y)
    Ss = boxsum(s * s)   # box(x^2)+box(y^2) = (Ss+Sd)/2 ;  box(xy) = (Ss-Sd)/4  (pre-/9)
    Sd = boxsum(d * d)

    sxsy = Sx * Sy
    sqsum = Sx * Sx + Sy * Sy
    n1 = 2.0 * sxsy + C1_81                      # 81*(2 mu_x mu_y + C1)
    n2 = 4.5 * (Ss - Sd) - 2.0 * sxsy + C2_81    # 81*(2 sigma_xy   + C2)
    d1 = sqsum + C1_81                           # 81*(mu_x^2+mu_y^2 + C1)
    d2 = 4.5 * (Ss + Sd) - sqsum + C2_81         # 81*(sigma_x+sigma_y + C2)

    num = n1 * n2
    den = d1 * d2
    r = pl.reciprocal(den, approx=True)          # EUP slot (idle here)
    r = r * (2.0 - den * r)                      # one Newton step -> ~1e-7 rel error
    ssim = num * r

    # Lane-dense per-step partial sum: reduce over batch (vreg adds) and rows (sublane
    # reduce); the final cross-lane sum happens once in the wrapper.
    part = jnp.sum(ssim, axis=0)                 # (H, KW)
    part = jnp.sum(part, axis=0, keepdims=True)  # (1, KW)
    out_ref[...] = part.reshape(1, 1, KW)


def _choose_k(H, W, group_bytes_cap):
    """Smallest k with (k*W) % 128 == 0 (lane-dense vregs, unmasked stores), capped."""
    k_align = 128 // math.gcd(W, 128)
    if k_align * W * H * 4 <= group_bytes_cap:
        return k_align
    # A fully aligned pack would exceed the per-group cap; fall back to the largest k
    # that fits (k == 1 means a single plane already exceeds the cap).
    # TODO(synk): for very large single planes, additionally tile along H.
    return max(1, group_bytes_cap // (H * W * 4))


def ssim_metric(x, y):
    """Pallas implementation of SSIM_Metric.forward.

    x, y: (N, C, H, W), NCHW like PyTorch.
    Returns (ssim_mean_scalar, jnp.array([numel(x)], int32)).
    """
    N, C, H, W = x.shape
    P = N * C

    if not jnp.issubdtype(x.dtype, jnp.floating):
        x = x.astype(jnp.float32)
    if not jnp.issubdtype(y.dtype, jnp.floating):
        y = y.astype(jnp.float32)
    # DMA in the caller's dtype (bf16 stays half-width on the wire); upcast in-kernel.
    xf = x.reshape(P, H, W)
    yf = y.reshape(P, H, W)

    # ---- per-chip VMEM budget --------------------------------------------------
    vmem_cap = None
    try:
        vmem_cap = getattr(pltpu.get_tpu_info(), "vmem_capacity_bytes", None)
    except Exception:
        vmem_cap = None
    big_vmem = vmem_cap is not None and vmem_cap >= 96 * 1024 * 1024
    # Per-input tile target; the roll dataflow keeps ~14-18 block-sized f32 temps live.
    target_bytes = (2 * 1024 * 1024) if big_vmem else (1 * 1024 * 1024)
    vmem_budget = (100 * 1024 * 1024) if big_vmem else (48 * 1024 * 1024)

    # ---- lane packing / tiling ---------------------------------------------------
    k = _choose_k(H, W, target_bytes)
    KW = k * W
    bytes_per_group = k * H * W * 4                      # f32 working size per group
    groups_needed = -(-P // k)                           # ceil(P / k)
    B = max(1, min(groups_needed, target_bytes // max(bytes_per_group, 1)))
    if groups_needed >= 2:
        # Keep >= 2 grid steps so the grid can split across TensorCores (v7x megacore).
        B = min(B, -(-groups_needed // 2))
    G = -(-groups_needed // B)
    Pk = G * B
    P_pad = Pk * k
    n_pad = P_pad - P

    if n_pad > 0:
        pad = jnp.zeros((n_pad, H, W), dtype=xf.dtype)
        xf = jnp.concatenate([xf, pad], axis=0)
        yf = jnp.concatenate([yf, pad], axis=0)

    xp = xf.reshape(Pk, k, H, W).transpose(0, 2, 1, 3).reshape(Pk, H, KW)
    yp = yf.reshape(Pk, k, H, W).transpose(0, 2, 1, 3).reshape(Pk, H, KW)

    # ---- boundary masks (fetched once via constant block index) -----------------
    colw = jnp.arange(KW, dtype=jnp.int32) % W
    row = jnp.arange(H, dtype=jnp.int32)
    has_l = (colw != 0).astype(jnp.float32)[None, :]
    has_r = (colw != (W - 1)).astype(jnp.float32)[None, :]
    has_t = (row != 0).astype(jnp.float32)[:, None]
    has_b = (row != (H - 1)).astype(jnp.float32)[:, None]
    ones_r = jnp.ones((H, 1), jnp.float32)
    ones_c = jnp.ones((1, KW), jnp.float32)
    masks = jnp.stack(
        [ones_r * has_l, ones_r * has_r, has_t * ones_c, has_b * ones_c], axis=0
    )  # (4, H, KW)

    est_peak = 18 * B * bytes_per_group + 2 * int(masks.size) * 4
    vmem_limit = int(min(vmem_budget, max(32 * 1024 * 1024, est_peak)))

    kernel = functools.partial(_ssim_kernel, H=H, KW=KW)

    partials = pl.pallas_call(
        kernel,
        out_shape=jax.ShapeDtypeStruct((G, 1, KW), jnp.float32),
        grid_spec=pltpu.PrefetchScalarGridSpec(
            num_scalar_prefetch=0,
            grid=(G,),
            in_specs=[
                pl.BlockSpec((4, H, KW), lambda i: (0, 0, 0)),   # masks: resident
                pl.BlockSpec((B, H, KW), lambda i: (i, 0, 0)),
                pl.BlockSpec((B, H, KW), lambda i: (i, 0, 0)),
            ],
            out_specs=pl.BlockSpec((1, 1, KW), lambda i: (i, 0, 0)),
        ),
        compiler_params=pltpu.CompilerParams(
            dimension_semantics=("parallel",),
            vmem_limit_bytes=vmem_limit,
        ),
    )(masks, xp, yp)

    # Padded (all-zero) planes evaluate to ssim == 1 everywhere (num == den == 81C1*81C2);
    # subtract their exact contribution before taking the true mean.
    total = jnp.sum(partials) - jnp.float32(n_pad * H * W)
    ssim_mean = total / jnp.float32(P * H * W)
    # TODO(synk): PyTorch returns int64; int32 here overflows for tensors with >2^31 elems.
    numel = jnp.array([x.size], dtype=jnp.int32)
    return ssim_mean, numel


def _ssim_reference(x, y):
    """Independent pure-JAX reference (matches F.avg_pool2d(k=3, s=1, p=1) semantics)."""
    def avg_pool(a):
        s = jax.lax.reduce_window(
            a, 0.0, jax.lax.add,
            window_dimensions=(1, 1, 3, 3),
            window_strides=(1, 1, 1, 1),
            padding=[(0, 0), (0, 0), (1, 1), (1, 1)],
        )
        return s / 9.0

    C1 = 0.01 ** 2
    C2 = 0.03 ** 2
    mu_x = avg_pool(x)
    mu_y = avg_pool(y)
    sigma_x = avg_pool(x ** 2) - mu_x ** 2
    sigma_y = avg_pool(y ** 2) - mu_y ** 2
    sigma_xy = avg_pool(x * y) - mu_x * mu_y
    ssim_n = (2 * mu_x * mu_y + C1) * (2 * sigma_xy + C2)
    ssim_d = (mu_x ** 2 + mu_y ** 2 + C1) * (sigma_x + sigma_y + C2)
    return (ssim_n / ssim_d).mean()


if __name__ == "__main__":
    key = jax.random.PRNGKey(0)
    kx, ky = jax.random.split(key)
    N, C, H, W = 2, 4, 16, 16
    x = jax.random.uniform(kx, (N, C, H, W), dtype=jnp.float32)
    y = jax.random.uniform(ky, (N, C, H, W), dtype=jnp.float32)

    ssim_mean, numel = ssim_metric(x, y)
    jax.block_until_ready(ssim_mean)
    jax.block_until_ready(numel)

    ref = _ssim_reference(x, y)
    assert jnp.allclose(ssim_mean, ref, atol=1e-5, rtol=1e-5), (float(ssim_mean), float(ref))
    assert int(numel[0]) == N * C * H * W

    print("KERNEL_OK")
</pallas_src>

<mosaic_0001>
module attributes {stable_mosaic.version = 11 : i64} {
  func.func @_ssim_kernel(%arg0: i32, %arg1: memref<4x16x128xf32, #tpu.memory_space<vmem>>, %arg2: memref<1x16x128xf32, #tpu.memory_space<vmem>>, %arg3: memref<1x16x128xf32, #tpu.memory_space<vmem>>, %arg4: memref<1x1x128xf32, #tpu.memory_space<vmem>>) attributes {dimension_semantics = [#tpu.dimension_semantics<parallel>], iteration_bounds = array<i64: 1>, scalar_prefetch = 0 : i64, scratch_operands = 0 : i64, tpu.core_type = #tpu.core_type<tc>, window_params = [{pipeline_mode = #tpu.pipeline_mode<synchronous>, transform_indices = @transform_0, window_bounds = array<i64: 4, 16, 128>}, {transform_indices = @transform_1, window_bounds = array<i64: 1, 16, 128>}, {transform_indices = @transform_2, window_bounds = array<i64: 1, 16, 128>}, {transform_indices = @transform_3, window_bounds = array<i64: 1, 1, 128>}]} {
    %c0 = arith.constant 0 : index
    %c0_0 = arith.constant 0 : index
    %c0_1 = arith.constant 0 : index
    %0 = vector.load %arg2[%c0, %c0_0, %c0_1] : memref<1x16x128xf32, #tpu.memory_space<vmem>>, vector<1x16x128xf32>
    %c0_2 = arith.constant 0 : index
    %c0_3 = arith.constant 0 : index
    %c0_4 = arith.constant 0 : index
    %1 = vector.load %arg3[%c0_2, %c0_3, %c0_4] : memref<1x16x128xf32, #tpu.memory_space<vmem>>, vector<1x16x128xf32>
    %c0_5 = arith.constant 0 : index
    %c0_6 = arith.constant 0 : index
    %c0_7 = arith.constant 0 : index
    %2 = vector.load %arg1[%c0_5, %c0_6, %c0_7] : memref<4x16x128xf32, #tpu.memory_space<vmem>>, vector<1x16x128xf32>
    %3 = vector.shape_cast %2 : vector<1x16x128xf32> to vector<16x128xf32>
    %c1 = arith.constant 1 : index
    %c0_8 = arith.constant 0 : index
    %c0_9 = arith.constant 0 : index
    %4 = vector.load %arg1[%c1, %c0_8, %c0_9] : memref<4x16x128xf32, #tpu.memory_space<vmem>>, vector<1x16x128xf32>
    %5 = vector.shape_cast %4 : vector<1x16x128xf32> to vector<16x128xf32>
    %c2 = arith.constant 2 : index
    %c0_10 = arith.constant 0 : index
    %c0_11 = arith.constant 0 : index
    %6 = vector.load %arg1[%c2, %c0_10, %c0_11] : memref<4x16x128xf32, #tpu.memory_space<vmem>>, vector<1x16x128xf32>
    %7 = vector.shape_cast %6 : vector<1x16x128xf32> to vector<16x128xf32>
    %c3 = arith.constant 3 : index
    %c0_12 = arith.constant 0 : index
    %c0_13 = arith.constant 0 : index
    %8 = vector.load %arg1[%c3, %c0_12, %c0_13] : memref<4x16x128xf32, #tpu.memory_space<vmem>>, vector<1x16x128xf32>
    %9 = vector.shape_cast %8 : vector<1x16x128xf32> to vector<16x128xf32>
    %10 = arith.addf %0, %1 : vector<1x16x128xf32>
    %11 = arith.subf %0, %1 : vector<1x16x128xf32>
    %c1_i32 = arith.constant 1 : i32
    %12 = tpu.dynamic_rotate %0 by %c1_i32 dim 2 : vector<1x16x128xf32>, i32 -> vector<1x16x128xf32>
    %13 = vector.shape_cast %3 : vector<16x128xf32> to vector<1x16x128xf32>
    %14 = arith.mulf %12, %13 : vector<1x16x128xf32>
    %15 = arith.addf %0, %14 : vector<1x16x128xf32>
    %c127_i32 = arith.constant 127 : i32
    %16 = tpu.dynamic_rotate %0 by %c127_i32 dim 2 : vector<1x16x128xf32>, i32 -> vector<1x16x128xf32>
    %17 = vector.shape_cast %5 : vector<16x128xf32> to vector<1x16x128xf32>
    %18 = arith.mulf %16, %17 : vector<1x16x128xf32>
    %19 = arith.addf %15, %18 : vector<1x16x128xf32>
    %c1_i32_14 = arith.constant 1 : i32
    %20 = tpu.dynamic_rotate %19 by %c1_i32_14 dim 1 : vector<1x16x128xf32>, i32 -> vector<1x16x128xf32>
    %21 = vector.shape_cast %7 : vector<16x128xf32> to vector<1x16x128xf32>
    %22 = arith.mulf %20, %21 : vector<1x16x128xf32>
    %23 = arith.addf %19, %22 : vector<1x16x128xf32>
    %c15_i32 = arith.constant 15 : i32
    %24 = tpu.dynamic_rotate %19 by %c15_i32 dim 1 : vector<1x16x128xf32>, i32 -> vector<1x16x128xf32>
    %25 = vector.shape_cast %9 : vector<16x128xf32> to vector<1x16x128xf32>
    %26 = arith.mulf %24, %25 : vector<1x16x128xf32>
    %27 = arith.addf %23, %26 : vector<1x16x128xf32>
    %c1_i32_15 = arith.constant 1 : i32
    %28 = tpu.dynamic_rotate %1 by %c1_i32_15 dim 2 : vector<1x16x128xf32>, i32 -> vector<1x16x128xf32>
    %29 = vector.shape_cast %3 : vector<16x128xf32> to vector<1x16x128xf32>
    %30 = arith.mulf %28, %29 : vector<1x16x128xf32>
    %31 = arith.addf %1, %30 : vector<1x16x128xf32>
    %c127_i32_16 = arith.constant 127 : i32
    %32 = tpu.dynamic_rotate %1 by %c127_i32_16 dim 2 : vector<1x16x128xf32>, i32 -> vector<1x16x128xf32>
    %33 = vector.shape_cast %5 : vector<16x128xf32> to vector<1x16x128xf32>
    %34 = arith.mulf %32, %33 : vector<1x16x128xf32>
    %35 = arith.addf %31, %34 : vector<1x16x128xf32>
    %c1_i32_17 = arith.constant 1 : i32
    %36 = tpu.dynamic_rotate %35 by %c1_i32_17 dim 1 : vector<1x16x128xf32>, i32 -> vector<1x16x128xf32>
    %37 = vector.shape_cast %7 : vector<16x128xf32> to vector<1x16x128xf32>
    %38 = arith.mulf %36, %37 : vector<1x16x128xf32>
    %39 = arith.addf %35, %38 : vector<1x16x128xf32>
    %c15_i32_18 = arith.constant 15 : i32
    %40 = tpu.dynamic_rotate %35 by %c15_i32_18 dim 1 : vector<1x16x128xf32>, i32 -> vector<1x16x128xf32>
    %41 = vector.shape_cast %9 : vector<16x128xf32> to vector<1x16x128xf32>
    %42 = arith.mulf %40, %41 : vector<1x16x128xf32>
    %43 = arith.addf %39, %42 : vector<1x16x128xf32>
    %44 = arith.mulf %10, %10 : vector<1x16x128xf32>
    %c1_i32_19 = arith.constant 1 : i32
    %45 = tpu.dynamic_rotate %44 by %c1_i32_19 dim 2 : vector<1x16x128xf32>, i32 -> vector<1x16x128xf32>
    %46 = vector.shape_cast %3 : vector<16x128xf32> to vector<1x16x128xf32>
    %47 = arith.mulf %45, %46 : vector<1x16x128xf32>
    %48 = arith.addf %44, %47 : vector<1x16x128xf32>
    %c127_i32_20 = arith.constant 127 : i32
    %49 = tpu.dynamic_rotate %44 by %c127_i32_20 dim 2 : vector<1x16x128xf32>, i32 -> vector<1x16x128xf32>
    %50 = vector.shape_cast %5 : vector<16x128xf32> to vector<1x16x128xf32>
    %51 = arith.mulf %49, %50 : vector<1x16x128xf32>
    %52 = arith.addf %48, %51 : vector<1x16x128xf32>
    %c1_i32_21 = arith.constant 1 : i32
    %53 = tpu.dynamic_rotate %52 by %c1_i32_21 dim 1 : vector<1x16x128xf32>, i32 -> vector<1x16x128xf32>
    %54 = vector.shape_cast %7 : vector<16x128xf32> to vector<1x16x128xf32>
    %55 = arith.mulf %53, %54 : vector<1x16x128xf32>
    %56 = arith.addf %52, %55 : vector<1x16x128xf32>
    %c15_i32_22 = arith.constant 15 : i32
    %57 = tpu.dynamic_rotate %52 by %c15_i32_22 dim 1 : vector<1x16x128xf32>, i32 -> vector<1x16x128xf32>
    %58 = vector.shape_cast %9 : vector<16x128xf32> to vector<1x16x128xf32>
    %59 = arith.mulf %57, %58 : vector<1x16x128xf32>
    %60 = arith.addf %56, %59 : vector<1x16x128xf32>
    %61 = arith.mulf %11, %11 : vector<1x16x128xf32>
    %c1_i32_23 = arith.constant 1 : i32
    %62 = tpu.dynamic_rotate %61 by %c1_i32_23 dim 2 : vector<1x16x128xf32>, i32 -> vector<1x16x128xf32>
    %63 = vector.shape_cast %3 : vector<16x128xf32> to vector<1x16x128xf32>
    %64 = arith.mulf %62, %63 : vector<1x16x128xf32>
    %65 = arith.addf %61, %64 : vector<1x16x128xf32>
    %c127_i32_24 = arith.constant 127 : i32
    %66 = tpu.dynamic_rotate %61 by %c127_i32_24 dim 2 : vector<1x16x128xf32>, i32 -> vector<1x16x128xf32>
    %67 = vector.shape_cast %5 : vector<16x128xf32> to vector<1x16x128xf32>
    %68 = arith.mulf %66, %67 : vector<1x16x128xf32>
    %69 = arith.addf %65, %68 : vector<1x16x128xf32>
    %c1_i32_25 = arith.constant 1 : i32
    %70 = tpu.dynamic_rotate %69 by %c1_i32_25 dim 1 : vector<1x16x128xf32>, i32 -> vector<1x16x128xf32>
    %71 = vector.shape_cast %7 : vector<16x128xf32> to vector<1x16x128xf32>
    %72 = arith.mulf %70, %71 : vector<1x16x128xf32>
    %73 = arith.addf %69, %72 : vector<1x16x128xf32>
    %c15_i32_26 = arith.constant 15 : i32
    %74 = tpu.dynamic_rotate %69 by %c15_i32_26 dim 1 : vector<1x16x128xf32>, i32 -> vector<1x16x128xf32>
    %75 = vector.shape_cast %9 : vector<16x128xf32> to vector<1x16x128xf32>
    %76 = arith.mulf %74, %75 : vector<1x16x128xf32>
    %77 = arith.addf %73, %76 : vector<1x16x128xf32>
    %78 = arith.mulf %27, %43 : vector<1x16x128xf32>
    %79 = arith.mulf %27, %27 : vector<1x16x128xf32>
    %80 = arith.mulf %43, %43 : vector<1x16x128xf32>
    %81 = arith.addf %79, %80 : vector<1x16x128xf32>
    %cst = arith.constant 2.000000e+00 : f32
    %82 = vector.broadcast %cst : f32 to vector<1x16x128xf32>
    %83 = arith.mulf %82, %78 : vector<1x16x128xf32>
    %cst_27 = arith.constant 8.100000e-03 : f32
    %84 = vector.broadcast %cst_27 : f32 to vector<1x16x128xf32>
    %85 = arith.addf %83, %84 : vector<1x16x128xf32>
    %86 = arith.subf %60, %77 : vector<1x16x128xf32>
    %cst_28 = arith.constant 4.500000e+00 : f32
    %87 = vector.broadcast %cst_28 : f32 to vector<1x16x128xf32>
    %88 = arith.mulf %87, %86 : vector<1x16x128xf32>
    %cst_29 = arith.constant 2.000000e+00 : f32
    %89 = vector.broadcast %cst_29 : f32 to vector<1x16x128xf32>
    %90 = arith.mulf %89, %78 : vector<1x16x128xf32>
    %91 = arith.subf %88, %90 : vector<1x16x128xf32>
    %cst_30 = arith.constant 7.290000e-02 : f32
    %92 = vector.broadcast %cst_30 : f32 to vector<1x16x128xf32>
    %93 = arith.addf %91, %92 : vector<1x16x128xf32>
    %cst_31 = arith.constant 8.100000e-03 : f32
    %94 = vector.broadcast %cst_31 : f32 to vector<1x16x128xf32>
    %95 = arith.addf %81, %94 : vector<1x16x128xf32>
    %96 = arith.addf %60, %77 : vector<1x16x128xf32>
    %cst_32 = arith.constant 4.500000e+00 : f32
    %97 = vector.broadcast %cst_32 : f32 to vector<1x16x128xf32>
    %98 = arith.mulf %97, %96 : vector<1x16x128xf32>
    %99 = arith.subf %98, %81 : vector<1x16x128xf32>
    %cst_33 = arith.constant 7.290000e-02 : f32
    %100 = vector.broadcast %cst_33 : f32 to vector<1x16x128xf32>
    %101 = arith.addf %99, %100 : vector<1x16x128xf32>
    %102 = arith.mulf %85, %93 : vector<1x16x128xf32>
    %103 = arith.mulf %95, %101 : vector<1x16x128xf32>
    %104 = tpu.reciprocal %103 {approx = true} : vector<1x16x128xf32> -> vector<1x16x128xf32>
    %105 = arith.mulf %103, %104 : vector<1x16x128xf32>
    %cst_34 = arith.constant 2.000000e+00 : f32
    %106 = vector.broadcast %cst_34 : f32 to vector<1x16x128xf32>
    %107 = arith.subf %106, %105 : vector<1x16x128xf32>
    %108 = arith.mulf %104, %107 : vector<1x16x128xf32>
    %109 = arith.mulf %102, %108 : vector<1x16x128xf32>
    %cst_35 = arith.constant dense<0.000000e+00> : vector<16x128xf32>
    %110 = vector.multi_reduction <add>, %109, %cst_35 [0] : vector<1x16x128xf32> to vector<16x128xf32>
    %cst_36 = arith.constant dense<0.000000e+00> : vector<128xf32>
    %111 = vector.multi_reduction <add>, %110, %cst_36 [0] : vector<16x128xf32> to vector<128xf32>
    %112 = vector.shape_cast %111 : vector<128xf32> to vector<1x128xf32>
    %113 = vector.shape_cast %112 : vector<1x128xf32> to vector<1x1x128xf32>
    %c0_37 = arith.constant 0 : index
    %c0_38 = arith.constant 0 : index
    %c0_39 = arith.constant 0 : index
    %114 = vector.load %arg4[%c0_37, %c0_38, %c0_39] : memref<1x1x128xf32, #tpu.memory_space<vmem>>, vector<1x1x128xf32>
    tpu.vector_store %arg4[%c0_37, %c0_38, %c0_39], %113 {strides = array<i32>} : memref<1x1x128xf32, #tpu.memory_space<vmem>>, vector<1x1x128xf32>,
    return
  }
  func.func @transform_0(%arg0: i32) -> (i32, i32, i32) {
    %c0_i32 = arith.constant 0 : i32
    %c0_i32_0 = arith.constant 0 : i32
    %c0_i32_1 = arith.constant 0 : i32
    %c0_i32_2 = arith.constant 0 : i32
    return %c0_i32, %c0_i32_0, %c0_i32_1 : i32, i32, i32
  }
  func.func @transform_1(%arg0: i32) -> (i32, i32, i32) {
    %c0_i32 = arith.constant 0 : i32
    %c0_i32_0 = arith.constant 0 : i32
    %c0_i32_1 = arith.constant 0 : i32
    return %arg0, %c0_i32, %c0_i32_0 : i32, i32, i32
  }
  func.func @transform_2(%arg0: i32) -> (i32, i32, i32) {
    %c0_i32 = arith.constant 0 : i32
    %c0_i32_0 = arith.constant 0 : i32
    %c0_i32_1 = arith.constant 0 : i32
    return %arg0, %c0_i32, %c0_i32_0 : i32, i32, i32
  }
  func.func @transform_3(%arg0: i32) -> (i32, i32, i32) {
    %c0_i32 = arith.constant 0 : i32
    %c0_i32_0 = arith.constant 0 : i32
    %c0_i32_1 = arith.constant 0 : i32
    return %arg0, %c0_i32, %c0_i32_0 : i32, i32, i32
  }
}

</mosaic_0001>

<bundles_post_ra>
// kernel: tpu_custom_call.1
= control target key start
LH: loop header
LB: loop body
LE: loop exit
PB: predicated region body
PF: predicated region fallthrough
CT: control target
= control target key end

     0   :  { %8 = vsyncpa [#allocation3], 0  ;;  %s465_s0 = inlined_call_operand.hbm [shape: f32[4,16,128], index: 0, kind: input, shape index: {}]   ;;  %s466_s1 = inlined_call_operand.hbm [shape: f32[1,16,128], index: 1, kind: input, shape index: {}]   ;;  %s467_s2 = inlined_call_operand.hbm [shape: f32[1,16,128], index: 2, kind: input, shape index: {}]   ;;  %s468_s3 = inlined_call_operand.hbm [shape: f32[1,1,128], index: 3, kind: output, shape index: {}]  }
   0x1   :  { %9 = vsyncpa [#allocation6], 0 }
   0x2   :  { %10 = vsyncpa [#allocation4], 0  ;;  %s379_s12 = smov [#allocation5]   ;;  %s380_s14 = smov [#allocation2]  }
   0x3   :  { %s28_s13 = sshll.u32 %s379_s12, 4  ;;  %s16_s15 = sshll.u32 %s380_s14, 4  ;;  %s29_s13 = int_to_ptr.vmem [resolvable:$true] %s28_s13  ;;  %s17_s15 = int_to_ptr.vmem [resolvable:$true] %s16_s15 }
   0x4   :  { %s301_s16 = scalar_lea.vmem %s29_s13, 256  ;;  %p306_p1 = scmp.lt.s32.totalorder %s29_s13, %s29_s13 }
   0x5   :  { %p302_p0 = scmp.ne.s32.totalorder %s29_s13, %s301_s16  ;;  %p307_p2 = scmp.lt.s32.totalorder %s301_s16, %s301_s16 }
   0x7   :  { %p308_p3 = por %p307_p2, %p306_p1 }
   0x9   :  { %p309_p4 = pnand %p308_p3, %p302_p0 }
   0xb   :  { %312 = shalt.err (!%p309_p4)
}
   0xc   :  { %s381_s17 = smov 128   ;;  %s382_s18 = smov 8  }
   0xd   :  { %34 = dma.hbm_to_vmem [thread:$0]  %s466_s1, 256, %s29_s13, [#allocation6], %s381_s17, %s381_s17, %s382_s18  }
   0xe   :  { %s321_s21 = scalar_lea.vmem %s17_s15, 1024  ;;  %p326_p6 = scmp.lt.s32.totalorder %s17_s15, %s17_s15 }
   0xf   :  { %p322_p5 = scmp.ne.s32.totalorder %s17_s15, %s321_s21  ;;  %p327_p7 = scmp.lt.s32.totalorder %s321_s21, %s321_s21 }
  0x11   :  { %p328_p8 = por %p327_p7, %p326_p6 }
  0x13   :  { %p329_p9 = pnand %p328_p8, %p322_p5 }
  0x15   :  { %332 = shalt.err (!%p329_p9)
}
  0x16   :  { %22 = dma.hbm_to_vmem [thread:$0]  %s465_s0, 1024, %s17_s15, [#allocation3], %s381_s17, %s381_s17, %s382_s18  }
  0x17   :  { %s383_s24 = smov [#allocation7]  }
  0x18   :  { %s40_s25 = sshll.u32 %s383_s24, 4  ;;  %s41_s25 = int_to_ptr.vmem [resolvable:$true] %s40_s25 }
  0x19   :  { %s341_s26 = scalar_lea.vmem %s41_s25, 256  ;;  %p346_p11 = scmp.lt.s32.totalorder %s41_s25, %s41_s25 }
  0x1a   :  { %p342_p10 = scmp.ne.s32.totalorder %s41_s25, %s341_s26  ;;  %p347_p12 = scmp.lt.s32.totalorder %s341_s26, %s341_s26 }
  0x1c   :  { %p348_p13 = por %p347_p12, %p346_p11 }
  0x1e   :  { %p349_p0 = pnand %p348_p13, %p342_p10 }
  0x20   :  { %352 = shalt.err (!%p349_p0)
}
  0x21   :  { %46 = dma.hbm_to_vmem [thread:$0]  %s467_s2, 256, %s41_s25, [#allocation6], %s381_s17, %s381_s17, %s382_s18  }
  0x22   :  { %373 = dma.done.wait [#allocation3], 1024  }
  0x23   :  { %374 = vsyncadd [#allocation3], 4294966272 }
  0x24   :  { %375 = dma.done.wait [#allocation6], 512  }
  0x25   :  { %376 = vsyncadd [#allocation6], 4294966784  ;;  %v58_v0 = vld [vmem:[#allocation7] sm:$0xff]  ;;  %v56_v1 = vld [vmem:[#allocation5] sm:$0xff]  ;;  %s384_s0 = smov 1   ;;  %s385_s2 = smov 127   ;;  %v93_v31 = vlaneseq }
  0x26   :  { %v59_v2 = vld [vmem:[#allocation7 + $0x8] sm:$0xff]  ;;  %111 = vrot.lane.b32.xlu1 %v58_v0, %s384_s0  ;;  %75 = vrot.lane.b32.xlu0 %v56_v1, %s384_s0  ;;  %v57_v3 = vld [vmem:[#allocation5 + $0x8] sm:$0xff]  ;;  %v71_v4 = vadd.f32 %v58_v0, %v56_v1  ;;  %v73_v6 = vsub.f32 %v56_v1, %v58_v0  ;;  %v60_v20 = vld [vmem:[#allocation2] sm:$0xff]  ;;  %s386_s28 = smov [#allocation8]  }
  0x27   :  { %v72_v5 = vadd.f32 %v59_v2, %v57_v3  ;;  %v74_v9 = vsub.f32 %v57_v3, %v59_v2  ;;  %v61_v21 = vld [vmem:[#allocation2 + $0x8] sm:$0xff]  ;;  %v64_v24 = vld [vmem:[#allocation2 + $0x18] sm:$0xff]  ;;  %v63_v25 = vld [vmem:[#allocation2 + $0x10] sm:$0xff]  ;;  %v424_v44 = vshrl.u32 %v93_v31, 7  ;;  %s271_s29 = sshll.u32 %s386_s28, 4  ;;  %s272_s29 = int_to_ptr.vmem [resolvable:$true] %s271_s29 }
  0x28   :  { %v143_v8 = vmul.f32 %v71_v4, %v71_v4  ;;  %v418_v11 = vmul.f32 %v73_v6, %v73_v6  ;;  %s353_s30 = scalar_lea.vmem %s272_s29, 16  ;;  %s357_s4 = scalar_lea.vmem %s272_s29, 32 }
  0x29   :  { %v144_v7 = vmul.f32 %v72_v5, %v72_v5  ;;  %v416_v10 = vmul.f32 %v74_v9, %v74_v9  ;;  %vm95_vm0 = vcmp.lt.s32.totalorder %v424_v44, 1  ;;  %vm104_vm1 = vcmp.lt.s32.totalorder %v424_v44, 7  ;;  %p354_p1 = scmp.ne.s32.totalorder %s272_s29, %s353_s30  ;;  %p358_p2 = scmp.lt.s32.totalorder %s272_s29, %s272_s29 }
  0x2a   :  { %113 = vrot.lane.b32.xlu1 %v59_v2, %s384_s0  ;;  %77 = vrot.lane.b32.xlu0 %v57_v3, %s384_s0  ;;  %p359_p3 = scmp.lt.s32.totalorder %s357_s4, %s353_s30 }
  0x2c   :  { %p360_p4 = por %p359_p3, %p358_p2 }
  0x2e   :  { %147 = vrot.lane.b32.xlu1 %v144_v7, %s384_s0  ;;  %145 = vrot.lane.b32.xlu0 %v143_v8, %s384_s0  ;;  %p361_p5 = pnand %p360_p4, %p354_p1 }
  0x32   :  { %181 = vrot.lane.b32.xlu1 %v416_v10, %s384_s0  ;;  %179 = vrot.lane.b32.xlu0 %v418_v11, %s384_s0 }
  0x36   :  { %85 = vrot.lane.b32.xlu1 %v57_v3, %s385_s2  ;;  %83 = vrot.lane.b32.xlu0 %v56_v1, %s385_s2 }
  0x3a   :  { %121 = vrot.lane.b32.xlu1 %v59_v2, %s385_s2  ;;  %119 = vrot.lane.b32.xlu0 %v58_v0, %s385_s2 }
  0x3e   :  { %155 = vrot.lane.b32.xlu1 %v144_v7, %s385_s2  ;;  %153 = vrot.lane.b32.xlu0 %v143_v8, %s385_s2 }
  0x42   :  { %189 = vrot.lane.b32.xlu1 %v416_v10, %s385_s2  ;;  %187 = vrot.lane.b32.xlu0 %v418_v11, %s385_s2 }
  0x98   :  { %v112_v12 = vpop.permute.xlu1 %111  ;;  %v76_v13 = vpop.permute.xlu0 %75 }
  0x99   :  { %v79_v26 = vmul.f32 %v76_v13, %v60_v20  ;;  %v115_v28 = vmul.f32 %v112_v12, %v60_v20  ;;  %v69_v12 = vld [vmem:[#allocation2 + $0x30] sm:$0xff]  ;;  %v70_v13 = vld [vmem:[#allocation2 + $0x38] sm:$0xff] }
  0x9b   :  { %v81_v35 = vadd.f32 %v79_v26, %v56_v1  ;;  %v117_v39 = vadd.f32 %v115_v28, %v58_v0 }
  0x9c   :  { %v114_v14 = vpop.permute.xlu1 %113  ;;  %v78_v15 = vpop.permute.xlu0 %77 }
  0x9d   :  { %v80_v27 = vmul.f32 %v78_v15, %v61_v21  ;;  %v116_v29 = vmul.f32 %v114_v14, %v61_v21 }
  0x9f   :  { %v82_v36 = vadd.f32 %v80_v27, %v57_v3  ;;  %v118_v40 = vadd.f32 %v116_v29, %v59_v2  ;;  %v66_v2 = vld [vmem:[#allocation2 + $0x20] sm:$0xff]  ;;  %v67_v3 = vld [vmem:[#allocation2 + $0x28] sm:$0xff] }
  0xa0   :  { %v148_v16 = vpop.permute.xlu1 %147  ;;  %v146_v17 = vpop.permute.xlu0 %145 }
  0xa1   :  { %v150_v41 = vmul.f32 %v148_v16, %v61_v21  ;;  %v149_v42 = vmul.f32 %v146_v17, %v60_v20 }
  0xa3   :  { %v152_v52 = vadd.f32 %v150_v41, %v144_v7  ;;  %v151_v53 = vadd.f32 %v149_v42, %v143_v8 }
  0xa4   :  { %v182_v18 = vpop.permute.xlu1 %181  ;;  %v180_v19 = vpop.permute.xlu0 %179 }
  0xa5   :  { %v184_v62 = vmul.f32 %v182_v18, %v61_v21  ;;  %v183_v63 = vmul.f32 %v180_v19, %v60_v20 }
  0xa7   :  { %v186_v26 = vadd.f32 %v184_v62, %v416_v10  ;;  %v185_v27 = vadd.f32 %v183_v63, %v418_v11 }
  0xa8   :  { %v86_v22 = vpop.permute.xlu1 %85  ;;  %v84_v23 = vpop.permute.xlu0 %83 }
  0xa9   :  { %v88_v30 = vmul.f32 %v86_v22, %v64_v24  ;;  %v87_v32 = vmul.f32 %v84_v23, %v63_v25 }
  0xab   :  { %v90_v43 = vadd.f32 %v88_v30, %v82_v36  ;;  %v89_v45 = vadd.f32 %v87_v32, %v81_v35 }
  0xac   :  { %v122_v33 = vpop.permute.xlu1 %121  ;;  %v120_v34 = vpop.permute.xlu0 %119 }
  0xad   :  { %v124_v37 = vmul.f32 %v122_v33, %v64_v24  ;;  %v123_v38 = vmul.f32 %v120_v34, %v63_v25  ;;  %v92_v56 = vrot.slane %v90_v43, 7  ;;  %v103_v57 = vrot.slane %v90_v43, 1 }
  0xae   :  { %v91_v58 = vrot.slane %v89_v45, 7  ;;  %v102_v59 = vrot.slane %v89_v45, 1 }
  0xaf   :  { %v126_v48 = vadd.f32 %v124_v37, %v118_v40  ;;  %v125_v49 = vadd.f32 %v123_v38, %v117_v39 }
  0xb0   :  { %v156_v46 = vpop.permute.xlu1 %155  ;;  %v154_v47 = vpop.permute.xlu0 %153  ;;  %v96_v4 = vsel %vm95_vm0, %v91_v58, %v92_v56  ;;  %v97_v5 = vsel %vm95_vm0, %v92_v56, %v91_v58  ;;  %v105_v6 = vsel %vm104_vm1, %v102_v59, %v103_v57  ;;  %v106_v7 = vsel %vm104_vm1, %v103_v57, %v102_v59 }
  0xb1   :  { %v158_v50 = vmul.f32 %v156_v46, %v64_v24  ;;  %v157_v51 = vmul.f32 %v154_v47, %v63_v25  ;;  %v128_v54 = vrot.slane %v126_v48, 7  ;;  %v127_v55 = vrot.slane %v125_v49, 7 }
  0xb2   :  { %v136_v14 = vrot.slane %v126_v48, 1  ;;  %v135_v15 = vrot.slane %v125_v49, 1  ;;  %v98_v20 = vmul.f32 %v97_v5, %v66_v2  ;;  %v99_v21 = vmul.f32 %v96_v4, %v67_v3 }
  0xb3   :  { %v160_v60 = vadd.f32 %v158_v50, %v152_v52  ;;  %v159_v61 = vadd.f32 %v157_v51, %v151_v53  ;;  %v129_v0 = vsel %vm95_vm0, %v127_v55, %v128_v54  ;;  %v130_v1 = vsel %vm95_vm0, %v128_v54, %v127_v55 }
  0xb4   :  { %v190_v8 = vpop.permute.xlu1 %189  ;;  %v188_v9 = vpop.permute.xlu0 %187  ;;  %v131_v18 = vmul.f32 %v130_v1, %v66_v2  ;;  %v132_v19 = vmul.f32 %v129_v0, %v67_v3  ;;  %v107_v28 = vmul.f32 %v105_v6, %v69_v12  ;;  %v108_v29 = vmul.f32 %v106_v7, %v70_v13 }
  0xb5   :  { %v162_v16 = vrot.slane %v160_v60, 7  ;;  %v161_v17 = vrot.slane %v159_v61, 7  ;;  %v192_v22 = vmul.f32 %v190_v8, %v64_v24  ;;  %v191_v23 = vmul.f32 %v188_v9, %v63_v25 }
  0xb6   :  { %v137_v30 = vsel %vm104_vm1, %v135_v15, %v136_v14  ;;  %v138_v31 = vsel %vm104_vm1, %v136_v14, %v135_v15  ;;  %v133_v24 = vadd.f32 %v131_v18, %v125_v49  ;;  %v134_v25 = vadd.f32 %v132_v19, %v126_v48 }
  0xb7   :  { %v163_v32 = vsel %vm95_vm0, %v161_v17, %v162_v16  ;;  %v164_v33 = vsel %vm95_vm0, %v162_v16, %v161_v17  ;;  %v170_v34 = vrot.slane %v160_v60, 1  ;;  %v169_v10 = vrot.slane %v159_v61, 1 }
  0xb8   :  { %v100_v35 = vadd.f32 %v98_v20, %v89_v45  ;;  %v101_v11 = vadd.f32 %v99_v21, %v90_v43  ;;  %v194_v36 = vadd.f32 %v192_v22, %v186_v26  ;;  %v193_v37 = vadd.f32 %v191_v23, %v185_v27 }
  0xb9   :  { %v139_v38 = vmul.f32 %v137_v30, %v69_v12  ;;  %v140_v39 = vmul.f32 %v138_v31, %v70_v13  ;;  %v165_v40 = vmul.f32 %v164_v33, %v66_v2  ;;  %v166_v41 = vmul.f32 %v163_v32, %v67_v3 }
  0xba   :  { %v196_v42 = vrot.slane %v194_v36, 7  ;;  %v204_v46 = vrot.slane %v194_v36, 1  ;;  %v195_v47 = vrot.slane %v193_v37, 7  ;;  %v203_v50 = vrot.slane %v193_v37, 1 }
  0xbb   :  { %v141_v51 = vadd.f32 %v139_v38, %v133_v24  ;;  %v142_v52 = vadd.f32 %v140_v39, %v134_v25  ;;  %v171_v49 = vsel %vm104_vm1, %v169_v10, %v170_v34  ;;  %v172_v48 = vsel %vm104_vm1, %v170_v34, %v169_v10 }
  0xbc   :  { %v197_v43 = vsel %vm95_vm0, %v195_v47, %v196_v42  ;;  %v198_v45 = vsel %vm95_vm0, %v196_v42, %v195_v47  ;;  %v205_v53 = vsel %vm104_vm1, %v203_v50, %v204_v46  ;;  %v206_v54 = vsel %vm104_vm1, %v204_v46, %v203_v50 }
  0xbd   :  { %v167_v55 = vadd.f32 %v165_v40, %v159_v61  ;;  %v168_v56 = vadd.f32 %v166_v41, %v160_v60  ;;  %v199_v57 = vmul.f32 %v198_v45, %v66_v2  ;;  %v200_v58 = vmul.f32 %v197_v43, %v67_v3 }
  0xbe   :  { %v109_v59 = vadd.f32 %v107_v28, %v100_v35  ;;  %v110_v62 = vadd.f32 %v108_v29, %v101_v11  ;;  %v173_v63 = vmul.f32 %v171_v49, %v69_v12  ;;  %v174_v0 = vmul.f32 %v172_v48, %v70_v13 }
  0xbf   :  { %v201_v1 = vadd.f32 %v199_v57, %v193_v37  ;;  %v202_v4 = vadd.f32 %v200_v58, %v194_v36  ;;  %v207_v5 = vmul.f32 %v205_v53, %v69_v12  ;;  %v208_v6 = vmul.f32 %v206_v54, %v70_v13 }
  0xc0   :  { %v215_v7 = vmul.f32 %v141_v51, %v141_v51  ;;  %v216_v8 = vmul.f32 %v142_v52, %v142_v52  ;;  %v175_v9 = vadd.f32 %v173_v63, %v167_v55  ;;  %v176_v14 = vadd.f32 %v174_v0, %v168_v56 }
  0xc1   :  { %v209_v15 = vadd.f32 %v207_v5, %v201_v1  ;;  %v210_v16 = vadd.f32 %v208_v6, %v202_v4  ;;  %v213_v44 = vmul.f32 %v109_v59, %v109_v59  ;;  %v214_v17 = vmul.f32 %v110_v62, %v110_v62 }
  0xc2   :  { %v211_v30 = vmul.f32 %v141_v51, %v109_v59  ;;  %v212_v31 = vmul.f32 %v142_v52, %v110_v62 }
  0xc3   :  { %v233_v61 = vadd.f32 %v209_v15, %v175_v9  ;;  %v234_v60 = vadd.f32 %v210_v16, %v176_v14  ;;  %v217_v2 = vadd.f32 %v215_v7, %v213_v44  ;;  %v218_v3 = vadd.f32 %v216_v8, %v214_v17 }
  0xc4   :  { %v223_v28 = vsub.f32 %v175_v9, %v209_v15  ;;  %v224_v29 = vsub.f32 %v176_v14, %v210_v16  ;;  %v219_v24 = vmul.f32 2.0, %v211_v30  ;;  %v220_v25 = vmul.f32 2.0, %v212_v31 }
  0xc5   :  { %v235_v18 = vmul.f32 4.5, %v233_v61  ;;  %v236_v19 = vmul.f32 4.5, %v234_v60  ;;  %v231_v22 = vadd.f32 0.0081, %v217_v2  ;;  %v232_v13 = vadd.f32 0.0081, %v218_v3 }
  0xc6   :  { %v225_v32 = vmul.f32 4.5, %v223_v28  ;;  %v226_v33 = vmul.f32 4.5, %v224_v29  ;;  %v221_v40 = vadd.f32 0.0081, %v219_v24  ;;  %v222_v42 = vadd.f32 0.0081, %v220_v25 }
  0xc7   :  { %v237_v20 = vsub.f32 %v235_v18, %v217_v2  ;;  %v238_v21 = vsub.f32 %v236_v19, %v218_v3 }
  0xc8   :  { %v227_v34 = vsub.f32 %v225_v32, %v219_v24  ;;  %v228_v10 = vsub.f32 %v226_v33, %v220_v25 }
  0xc9   :  { %v239_v23 = vadd.f32 0.0729, %v237_v20  ;;  %v240_v12 = vadd.f32 0.0729, %v238_v21 }
  0xca   :  { %v229_v36 = vadd.f32 0.0729, %v227_v34  ;;  %v230_v38 = vadd.f32 0.0729, %v228_v10 }
  0xcb   :  { %v243_v26 = vmul.f32 %v239_v23, %v231_v22  ;;  %v244_v27 = vmul.f32 %v240_v12, %v232_v13 }
  0xcc   :  { %v241_v47 = vmul.f32 %v229_v36, %v221_v40  ;;  %v242_v51 = vmul.f32 %v230_v38, %v222_v42 }
  0xcd   :  { %289 = vrcp.f32 %v243_v26 }
  0xce   :  { %291 = vrcp.f32 %v244_v27 }
  0xda   :  { %v290_v35 = vpop.eup %289 }
  0xdb   :  { %v292_v11 = vpop.eup %291  ;;  %v247_v37 = vmul.f32 %v290_v35, %v243_v26 }
  0xdc   :  { %v248_v39 = vmul.f32 %v292_v11, %v244_v27 }
  0xdd   :  { %v249_v41 = vsub.f32 2.0, %v247_v37 }
  0xde   :  { %v250_v46 = vsub.f32 2.0, %v248_v39 }
  0xdf   :  { %v251_v50 = vmul.f32 %v290_v35, %v249_v41 }
  0xe0   :  { %v252_v52 = vmul.f32 %v292_v11, %v250_v46 }
  0xe1   :  { %v253_v49 = vmul.f32 %v251_v50, %v241_v47 }
  0xe2   :  { %v254_v48 = vmul.f32 %v252_v52, %v242_v51 }
  0xe4   :  { %v257_v43 = vadd.f32 %v254_v48, %v253_v49 }
  0xe6   :  { %v258_v45 = vrot.slane %v257_v43, 4 }
  0xe8   :  { %v259_v53 = vadd.f32 %v258_v45, %v257_v43 }
  0xea   :  { %v260_v54 = vrot.slane %v259_v53, 2 }
  0xec   :  { %v261_v55 = vadd.f32 %v260_v54, %v259_v53 }
  0xee   :  { %v262_v56 = vrot.slane %v261_v55, 1 }
  0xf0   :  { %v263_v57 = vadd.f32 %v262_v56, %v261_v55 }
  0xf2   :  { %264 = vst [vmem:[#allocation8] sm:$0x1] %v263_v57 }
  0xf3   :  { %364 = shalt.err (!%p361_p5)
}
  0xf4   :  { %274 = dma.vmem_to_hbm [thread:$0]  %s272_s29, 16, %s468_s3, [#allocation4]  }
  0xf5   :  { %377 = dma.done.wait [#allocation4], 16  }
  0xf6   :  { %378 = vsyncadd [#allocation4], 4294967280 }
  0xf7   :  { %278 = vsyncpa [#allocation3], 1 }
  0xf8   :  { %279 = vsyncpa [#allocation6], 1 }
  0xf9   :  { %280 = vsyncpa [#allocation4], 1 }

</bundles_post_ra>
